<compile_context>
chip_gen: v7x
topology: tpu7x:2x2x1
jax: 0.10.0
libtpu: 0.0.40
codegen_flags: <defaults>
</compile_context>

<pallas_src>
import math
import functools

import jax
import jax.numpy as jnp
from jax.experimental import pallas as pl
from jax.experimental.pallas import tpu as pltpu


# ----------------------------------------------------------------------------
# helpers
# ----------------------------------------------------------------------------
def _tile(dim: int, cap: int, align: int) -> int:
    """Largest divisor of `dim` that is <= cap and a multiple of `align`.
    Falls back to the full dim (full dims are always legal block shapes)."""
    if dim <= cap:
        return dim
    t = (cap // align) * align
    while t >= align:
        if dim % t == 0:
            return t
        t -= align
    return dim


def _vmem_limit_bytes() -> int:
    """Generation-aware scoped-VMEM limit (~75% of physical, capped at 96 MiB)."""
    try:
        cap = pltpu.get_tpu_info().vmem_capacity_bytes
        return int(min(cap * 3 // 4, 96 * 1024 * 1024))
    except Exception:
        return 32 * 1024 * 1024


_VMEM_LIMIT = _vmem_limit_bytes()

# Fuse LayerNorm into a matmul prologue only when the full contraction (K) fits
# a single tile; otherwise fall back to a standalone LN kernel + tiled matmul.
_MAX_FUSED_K = 2048


def _layer_norm_rows(x_f32, gamma, beta, eps):
    """Spec LayerNorm: unbiased variance (/(D-1)), eps OUTSIDE the sqrt."""
    d = x_f32.shape[-1]
    mean = jnp.mean(x_f32, axis=-1, keepdims=True)
    xc = x_f32 - mean
    denom = jnp.float32(1.0 / (d - 1 if d > 1 else 1))
    var = jnp.sum(xc * xc, axis=-1, keepdims=True) * denom
    inv = pl.reciprocal(jnp.sqrt(var) + jnp.float32(eps))   # EUP reciprocal
    return gamma * xc * inv + beta


# ----------------------------------------------------------------------------
# Kernel 1: standalone LayerNorm (fallback path when K is too large to fuse)
# ----------------------------------------------------------------------------
def _layernorm_kernel(x_ref, g_ref, b_ref, o_ref, *, eps: float):
    x = x_ref[...].astype(jnp.float32)                       # (tm, D)
    y = _layer_norm_rows(x, g_ref[...], b_ref[...], eps)
    o_ref[...] = y.astype(o_ref.dtype)


def layernorm(x2d, gamma, beta, *, eps: float):
    M, D = x2d.shape
    tm = _tile(M, 1024, 8)
    g2d = gamma.reshape(1, D).astype(jnp.float32)
    b2d = beta.reshape(1, D).astype(jnp.float32)
    return pl.pallas_call(
        functools.partial(_layernorm_kernel, eps=eps),
        out_shape=jax.ShapeDtypeStruct((M, D), x2d.dtype),
        grid=(M // tm,),
        in_specs=[
            pl.BlockSpec((tm, D), lambda i: (i, 0)),
            pl.BlockSpec((1, D), lambda i: (0, 0)),
            pl.BlockSpec((1, D), lambda i: (0, 0)),
        ],
        out_specs=pl.BlockSpec((tm, D), lambda i: (i, 0)),
        compiler_params=pltpu.CompilerParams(
            dimension_semantics=("parallel",),
            vmem_limit_bytes=_VMEM_LIMIT,
        ),
    )(x2d, g2d, b2d)


# ----------------------------------------------------------------------------
# Kernel 2: fused LayerNorm + QKV projection
#   x [M, D]  ->  qkv [3, M, D]   (grid axis 1 selects q / k / v)
# ----------------------------------------------------------------------------
def _ln_qkv_kernel(x_ref, g_ref, b_ref, w_ref, bias_ref, o_ref, *, eps: float):
    x = x_ref[...].astype(jnp.float32)                       # (tm, D)
    xn = _layer_norm_rows(x, g_ref[...], b_ref[...], eps).astype(x_ref.dtype)
    y = jnp.dot(xn, w_ref[0], preferred_element_type=jnp.float32) + bias_ref[0]
    o_ref[0] = y.astype(o_ref.dtype)


def ln_qkv_proj(x2d, gamma, beta, wqkv, bqkv, *, eps: float):
    """x2d: [M, D]; wqkv: [3, D, D]; bqkv: [3, 1, D]  ->  [3, M, D]."""
    M, D = x2d.shape
    tm = _tile(M, 512, 8)
    tn = _tile(D, 512, 128)
    g2d = gamma.reshape(1, D).astype(jnp.float32)
    b2d = beta.reshape(1, D).astype(jnp.float32)
    return pl.pallas_call(
        functools.partial(_ln_qkv_kernel, eps=eps),
        out_shape=jax.ShapeDtypeStruct((3, M, D), x2d.dtype),
        grid=(M // tm, 3, D // tn),
        in_specs=[
            pl.BlockSpec((tm, D), lambda i, j, n: (i, 0)),       # x (re-fetch skipped across j, n)
            pl.BlockSpec((1, D), lambda i, j, n: (0, 0)),        # gamma
            pl.BlockSpec((1, D), lambda i, j, n: (0, 0)),        # beta
            pl.BlockSpec((1, D, tn), lambda i, j, n: (j, 0, n)), # stacked weight
            pl.BlockSpec((1, 1, tn), lambda i, j, n: (j, 0, n)), # stacked bias
        ],
        out_specs=pl.BlockSpec((1, tm, tn), lambda i, j, n: (j, i, n)),
        compiler_params=pltpu.CompilerParams(
            dimension_semantics=("parallel", "parallel", "parallel"),
            vmem_limit_bytes=_VMEM_LIMIT,
        ),
    )(x2d, g2d, b2d, wqkv, bqkv)


# ----------------------------------------------------------------------------
# Kernel 3: fused LayerNorm + Linear (+ optional ReLU)  — used for FFN layer 1
# ----------------------------------------------------------------------------
def _ln_linear_kernel(x_ref, g_ref, b_ref, w_ref, bias_ref, o_ref, *,
                      eps: float, relu: bool):
    x = x_ref[...].astype(jnp.float32)                       # (tm, K)
    xn = _layer_norm_rows(x, g_ref[...], b_ref[...], eps).astype(x_ref.dtype)
    y = jnp.dot(xn, w_ref[...], preferred_element_type=jnp.float32) + bias_ref[...]
    if relu:
        y = jnp.maximum(y, 0.0)
    o_ref[...] = y.astype(o_ref.dtype)


def ln_linear(x2d, gamma, beta, w, b, *, eps: float, relu: bool = False):
    """LayerNorm(x2d) @ w + b, fused.  x2d: [M, K], w: [K, N]."""
    M, K = x2d.shape
    K2, N = w.shape
    assert K2 == K
    if K > _MAX_FUSED_K:
        xn = layernorm(x2d, gamma, beta, eps=eps)
        return linear(xn, w, b, relu=relu)
    tm = _tile(M, 512, 8)
    tn = _tile(N, 512, 128)
    g2d = gamma.reshape(1, K).astype(jnp.float32)
    b2d_ln = beta.reshape(1, K).astype(jnp.float32)
    bias2d = b.reshape(1, N)
    return pl.pallas_call(
        functools.partial(_ln_linear_kernel, eps=eps, relu=relu),
        out_shape=jax.ShapeDtypeStruct((M, N), x2d.dtype),
        grid=(M // tm, N // tn),
        in_specs=[
            pl.BlockSpec((tm, K), lambda i, j: (i, 0)),
            pl.BlockSpec((1, K), lambda i, j: (0, 0)),
            pl.BlockSpec((1, K), lambda i, j: (0, 0)),
            pl.BlockSpec((K, tn), lambda i, j: (0, j)),
            pl.BlockSpec((1, tn), lambda i, j: (0, j)),
        ],
        out_specs=pl.BlockSpec((tm, tn), lambda i, j: (i, j)),
        compiler_params=pltpu.CompilerParams(
            dimension_semantics=("parallel", "parallel"),
            vmem_limit_bytes=_VMEM_LIMIT,
        ),
    )(x2d, g2d, b2d_ln, w, bias2d)


# ----------------------------------------------------------------------------
# Kernel 4: tiled Linear = x @ W + b, optional fused ReLU / residual add
# ----------------------------------------------------------------------------
def _linear_kernel(x_ref, w_ref, b_ref, *rest, relu: bool, has_residual: bool):
    if has_residual:
        r_ref, o_ref, acc_ref = rest
    else:
        o_ref, acc_ref = rest
        r_ref = None
    k = pl.program_id(2)

    @pl.when(k == 0)
    def _():
        acc_ref[...] = jnp.zeros_like(acc_ref)

    acc_ref[...] += jnp.dot(x_ref[...], w_ref[...],
                            preferred_element_type=jnp.float32)

    @pl.when(k == pl.num_programs(2) - 1)
    def _():
        y = acc_ref[...] + b_ref[...]
        if relu:
            y = jnp.maximum(y, 0.0)
        if has_residual:
            y = y + r_ref[...].astype(jnp.float32)
        o_ref[...] = y.astype(o_ref.dtype)


def linear(x2d, w, b, *, relu: bool = False, residual=None):
    """x2d: [M, K], w: [K, N] (already transposed vs. torch), b: [N]."""
    M, K = x2d.shape
    K2, N = w.shape
    assert K2 == K
    tm = _tile(M, 512, 8)
    tn = _tile(N, 512, 128)
    tk = _tile(K, 1024, 128)
    b2d = b.reshape(1, N)

    in_specs = [
        pl.BlockSpec((tm, tk), lambda i, j, k: (i, k)),
        pl.BlockSpec((tk, tn), lambda i, j, k: (k, j)),
        pl.BlockSpec((1, tn), lambda i, j, k: (0, j)),
    ]
    args = [x2d, w, b2d]
    if residual is not None:
        in_specs.append(pl.BlockSpec((tm, tn), lambda i, j, k: (i, j)))
        args.append(residual)

    kernel = functools.partial(
        _linear_kernel, relu=relu, has_residual=residual is not None
    )
    return pl.pallas_call(
        kernel,
        out_shape=jax.ShapeDtypeStruct((M, N), x2d.dtype),
        grid=(M // tm, N // tn, K // tk),
        in_specs=in_specs,
        out_specs=pl.BlockSpec((tm, tn), lambda i, j, k: (i, j)),
        scratch_shapes=[pltpu.VMEM((tm, tn), jnp.float32)],
        compiler_params=pltpu.CompilerParams(
            dimension_semantics=("parallel", "parallel", "arbitrary"),
            vmem_limit_bytes=_VMEM_LIMIT,
        ),
    )(*args)


# ----------------------------------------------------------------------------
# Kernel 5: multi-head scaled dot-product attention
#   grid = (batch, query-tiles); q/k/v come straight from the stacked
#   [3, B, S, D] projection output via BlockSpec index_maps (no XLA transposes).
#   Per-head split is done with static in-VMEM lane slices; the output is a
#   single lane-dense (tq, D) store.
# ----------------------------------------------------------------------------
def _attention_kernel(*refs, num_heads: int, sm_scale: float, has_mask: bool):
    if has_mask:
        q_ref, k_ref, v_ref, m_ref, o_ref = refs
    else:
        q_ref, k_ref, v_ref, o_ref = refs
        m_ref = None

    q2d = q_ref[0, 0]                       # (tq, D), input dtype (MXU-native)
    k2d = k_ref[0, 0]                       # (S,  D)
    v2d = v_ref[0, 0]                       # (S,  D)
    D = q2d.shape[-1]
    dk = D // num_heads
    if has_mask:
        mrow = m_ref[0]                     # (1, S) — key-position mask (1 = keep)

    outs = []
    for h in range(num_heads):              # static unroll over heads
        lo, hi = h * dk, (h + 1) * dk
        q_h, k_h, v_h = q2d[:, lo:hi], k2d[:, lo:hi], v2d[:, lo:hi]
        s = jnp.einsum("qd,kd->qk", q_h, k_h,
                       preferred_element_type=jnp.float32) * jnp.float32(sm_scale)
        if has_mask:
            s = jnp.where(mrow == 0.0, jnp.float32(-1e9), s)
        m = jnp.max(s, axis=-1, keepdims=True)
        p = jnp.exp(s - m)
        inv = pl.reciprocal(jnp.sum(p, axis=-1, keepdims=True), approx=True)
        attn = (p * inv).astype(v_h.dtype)
        outs.append(jnp.dot(attn, v_h, preferred_element_type=jnp.float32))

    out = jnp.concatenate(outs, axis=-1)    # (tq, D) — lane-dense single store
    o_ref[0] = out.astype(o_ref.dtype)


def mha_attention(qkv, num_heads: int, mask=None):
    """qkv: [3, B, S, D] (stacked q/k/v); mask (optional): [B, 1, S] floats."""
    _, B, S, D = qkv.shape
    dk = D // num_heads
    tq = _tile(S, 512, 8)

    in_specs = [
        pl.BlockSpec((1, 1, tq, D), lambda b, qi: (0, b, qi, 0)),   # q tile
        pl.BlockSpec((1, 1, S, D), lambda b, qi: (1, b, 0, 0)),     # all keys
        pl.BlockSpec((1, 1, S, D), lambda b, qi: (2, b, 0, 0)),     # all values
    ]
    args = [qkv, qkv, qkv]
    has_mask = mask is not None
    if has_mask:
        in_specs.append(pl.BlockSpec((1, 1, S), lambda b, qi: (b, 0, 0)))
        args.append(mask)

    kernel = functools.partial(
        _attention_kernel, num_heads=num_heads,
        sm_scale=1.0 / math.sqrt(dk), has_mask=has_mask,
    )
    # TODO(synk): flash-style key-axis tiling (online softmax with VMEM
    #             accumulators) for very long sequences / v7x VMEM headroom.
    return pl.pallas_call(
        kernel,
        out_shape=jax.ShapeDtypeStruct((B, S, D), qkv.dtype),
        grid=(B, S // tq),
        in_specs=in_specs,
        out_specs=pl.BlockSpec((1, tq, D), lambda b, qi: (b, qi, 0)),
        compiler_params=pltpu.CompilerParams(
            dimension_semantics=("parallel", "parallel"),
            vmem_limit_bytes=_VMEM_LIMIT,
        ),
    )(*args)


# ----------------------------------------------------------------------------
# EncoderBlock forward (eval mode)
# ----------------------------------------------------------------------------
def prepare_params(params):
    """Pre-stack q/k/v weights once so the forward pass pays no per-call concat."""
    p = dict(params)
    p["wqkv"] = jnp.stack([params["wq"], params["wk"], params["wv"]])           # [3, D, D]
    p["bqkv"] = jnp.stack([params["bq"], params["bk"], params["bv"]])[:, None]  # [3, 1, D]
    return p


def encoder_block_forward(x, params, *, num_heads: int, eps: float,
                          dropout: float = 0.0, src_mask=None):
    """x: [B, S, D].  src_mask (optional): [B, 1, 1, S]."""
    del dropout  # identity in eval mode
    B, S, D = x.shape
    M = B * S
    x2d = x.reshape(M, D)

    wqkv = params.get("wqkv")
    bqkv = params.get("bqkv")
    if wqkv is None or bqkv is None:
        wqkv = jnp.stack([params["wq"], params["wk"], params["wv"]])
        bqkv = jnp.stack([params["bq"], params["bk"], params["bv"]])[:, None]

    # ---- MHA sublayer: x + w_o(attn(LN1(x))) ----
    if D <= _MAX_FUSED_K:
        qkv = ln_qkv_proj(x2d, params["ln1_gamma"], params["ln1_beta"],
                          wqkv, bqkv, eps=eps)                      # [3, M, D]
    else:  # fallback: standalone LN + three projections
        xn = layernorm(x2d, params["ln1_gamma"], params["ln1_beta"], eps=eps)
        qkv = jnp.stack([linear(xn, params["wq"], params["bq"]),
                         linear(xn, params["wk"], params["bk"]),
                         linear(xn, params["wv"], params["bv"])])
    qkv = qkv.reshape(3, B, S, D)

    mask = None
    if src_mask is not None:
        mask = src_mask.reshape(B, 1, S).astype(jnp.float32)

    attn = mha_attention(qkv, num_heads, mask=mask)                 # [B, S, D]
    x2d = linear(attn.reshape(M, D), params["wo"], params["bo"], residual=x2d)

    # ---- FFN sublayer: x + W2(relu(W1(LN2(x)))) ----
    h = ln_linear(x2d, params["ln2_gamma"], params["ln2_beta"],
                  params["w1"], params["b1"], eps=eps, relu=True)
    x2d = linear(h, params["w2"], params["b2"], residual=x2d)

    return x2d.reshape(B, S, D)


# ----------------------------------------------------------------------------
# Pure-JAX reference (eval mode) for correctness checking
# ----------------------------------------------------------------------------
def encoder_block_reference(x, params, *, num_heads: int, eps: float, src_mask=None):
    B, S, D = x.shape
    H = num_heads
    dk = D // H

    def ln(t, g, b):
        mean = jnp.mean(t, axis=-1, keepdims=True)
        var = jnp.var(t, axis=-1, keepdims=True, ddof=1)
        return g * (t - mean) / (jnp.sqrt(var) + eps) + b

    xn = ln(x, params["ln1_gamma"], params["ln1_beta"])
    q = xn @ params["wq"] + params["bq"]
    k = xn @ params["wk"] + params["bk"]
    v = xn @ params["wv"] + params["bv"]

    def split(t):
        return t.reshape(B, S, H, dk).transpose(0, 2, 1, 3)

    qh, kh, vh = split(q), split(k), split(v)
    s = qh @ kh.transpose(0, 1, 3, 2) / math.sqrt(dk)
    if src_mask is not None:
        s = jnp.where(src_mask == 0, -1e9, s)
    p = jax.nn.softmax(s, axis=-1)
    o = (p @ vh).transpose(0, 2, 1, 3).reshape(B, S, D)
    x = x + (o @ params["wo"] + params["bo"])
    xn = ln(x, params["ln2_gamma"], params["ln2_beta"])
    h = jnp.maximum(xn @ params["w1"] + params["b1"], 0.0)
    x = x + (h @ params["w2"] + params["b2"])
    return x


# ----------------------------------------------------------------------------
# Demo / self-check
# ----------------------------------------------------------------------------
if __name__ == "__main__":
    B, S, D, H, D_FF = 2, 8, 32, 4, 64
    EPS = 1e-6
    DROPOUT = 0.1  # identity in eval-mode forward

    keys = jax.random.split(jax.random.PRNGKey(0), 16)

    def w(key, shape, scale=0.1):
        return scale * jax.random.normal(key, shape, dtype=jnp.float32)

    params = {
        "ln1_gamma": jnp.ones((D,), jnp.float32),
        "ln1_beta": jnp.zeros((D,), jnp.float32),
        "wq": w(keys[0], (D, D)), "bq": w(keys[1], (D,), 0.02),
        "wk": w(keys[2], (D, D)), "bk": w(keys[3], (D,), 0.02),
        "wv": w(keys[4], (D, D)), "bv": w(keys[5], (D,), 0.02),
        "wo": w(keys[6], (D, D)), "bo": w(keys[7], (D,), 0.02),
        "ln2_gamma": jnp.ones((D,), jnp.float32),
        "ln2_beta": jnp.zeros((D,), jnp.float32),
        "w1": w(keys[8], (D, D_FF)), "b1": w(keys[9], (D_FF,), 0.02),
        "w2": w(keys[10], (D_FF, D)), "b2": w(keys[11], (D,), 0.02),
    }
    params_prepared = prepare_params(params)
    x = jax.random.normal(keys[12], (B, S, D), dtype=jnp.float32)

    # --- no mask (module default) ---
    out = jax.block_until_ready(
        encoder_block_forward(x, params_prepared, num_heads=H, eps=EPS,
                              dropout=DROPOUT)
    )
    ref = encoder_block_reference(x, params, num_heads=H, eps=EPS)
    assert out.shape == (B, S, D)
    assert jnp.allclose(out, ref, atol=2e-2, rtol=2e-2), float(jnp.max(jnp.abs(out - ref)))

    # --- with a src_mask of shape [B, 1, 1, S] ---
    src_mask = jnp.ones((B, 1, 1, S), jnp.float32).at[1, :, :, -2:].set(0.0)
    out_m = jax.block_until_ready(
        encoder_block_forward(x, params_prepared, num_heads=H, eps=EPS,
                              dropout=DROPOUT, src_mask=src_mask)
    )
    ref_m = encoder_block_reference(x, params, num_heads=H, eps=EPS, src_mask=src_mask)
    assert jnp.allclose(out_m, ref_m, atol=2e-2, rtol=2e-2), \
        float(jnp.max(jnp.abs(out_m - ref_m)))

    print("KERNEL_OK")
</pallas_src>

<mosaic_0001>
module attributes {stable_mosaic.version = 11 : i64} {
  func.func @_ln_qkv_kernel(%arg0: i32, %arg1: i32, %arg2: i32, %arg3: memref<16x32xf32, #tpu.memory_space<vmem>>, %arg4: memref<1x32xf32, #tpu.memory_space<vmem>>, %arg5: memref<1x32xf32, #tpu.memory_space<vmem>>, %arg6: memref<1x32x32xf32, #tpu.memory_space<vmem>>, %arg7: memref<1x1x32xf32, #tpu.memory_space<vmem>>, %arg8: memref<1x16x32xf32, #tpu.memory_space<vmem>>) attributes {dimension_semantics = [#tpu.dimension_semantics<parallel>, #tpu.dimension_semantics<parallel>, #tpu.dimension_semantics<parallel>], iteration_bounds = array<i64: 1, 3, 1>, scalar_prefetch = 0 : i64, scratch_operands = 0 : i64, tpu.core_type = #tpu.core_type<tc>, window_params = [{transform_indices = @transform_0, window_bounds = array<i64: 16, 32>}, {pipeline_mode = #tpu.pipeline_mode<synchronous>, transform_indices = @transform_1, window_bounds = array<i64: 1, 32>}, {pipeline_mode = #tpu.pipeline_mode<synchronous>, transform_indices = @transform_2, window_bounds = array<i64: 1, 32>}, {transform_indices = @transform_3, window_bounds = array<i64: 1, 32, 32>}, {transform_indices = @transform_4, window_bounds = array<i64: 1, 1, 32>}, {transform_indices = @transform_5, window_bounds = array<i64: 1, 16, 32>}]} {
    %c0 = arith.constant 0 : index
    %c0_0 = arith.constant 0 : index
    %0 = vector.load %arg3[%c0, %c0_0] : memref<16x32xf32, #tpu.memory_space<vmem>>, vector<16x32xf32>
    %c0_1 = arith.constant 0 : index
    %c0_2 = arith.constant 0 : index
    %1 = vector.load %arg4[%c0_1, %c0_2] : memref<1x32xf32, #tpu.memory_space<vmem>>, vector<1x32xf32>
    %c0_3 = arith.constant 0 : index
    %c0_4 = arith.constant 0 : index
    %2 = vector.load %arg5[%c0_3, %c0_4] : memref<1x32xf32, #tpu.memory_space<vmem>>, vector<1x32xf32>
    %cst = arith.constant dense<0.000000e+00> : vector<16xf32>
    %3 = vector.multi_reduction <add>, %0, %cst [1] : vector<16x32xf32> to vector<16xf32>
    %4 = vector.shape_cast %3 : vector<16xf32> to vector<16x1xf32>
    %cst_5 = arith.constant 3.200000e+01 : f32
    %5 = vector.broadcast %cst_5 : f32 to vector<16x1xf32>
    %6 = arith.divf %4, %5 : vector<16x1xf32>
    %7 = vector.broadcast %6 : vector<16x1xf32> to vector<16x32xf32>
    %8 = arith.subf %0, %7 : vector<16x32xf32>
    %9 = arith.mulf %8, %8 : vector<16x32xf32>
    %cst_6 = arith.constant dense<0.000000e+00> : vector<16xf32>
    %10 = vector.multi_reduction <add>, %9, %cst_6 [1] : vector<16x32xf32> to vector<16xf32>
    %11 = vector.shape_cast %10 : vector<16xf32> to vector<16x1xf32>
    %cst_7 = arith.constant 0.0322580636 : f32
    %12 = vector.broadcast %cst_7 : f32 to vector<16x1xf32>
    %13 = arith.mulf %11, %12 : vector<16x1xf32>
    %14 = math.sqrt %13 : vector<16x1xf32>
    %cst_8 = arith.constant 9.99999997E-7 : f32
    %15 = vector.broadcast %cst_8 : f32 to vector<16x1xf32>
    %16 = arith.addf %14, %15 : vector<16x1xf32>
    %17 = tpu.reciprocal %16 : vector<16x1xf32> -> vector<16x1xf32>
    %18 = vector.broadcast %1 : vector<1x32xf32> to vector<16x32xf32>
    %19 = arith.mulf %18, %8 : vector<16x32xf32>
    %20 = vector.broadcast %17 : vector<16x1xf32> to vector<16x32xf32>
    %21 = arith.mulf %19, %20 : vector<16x32xf32>
    %22 = vector.broadcast %2 : vector<1x32xf32> to vector<16x32xf32>
    %23 = arith.addf %21, %22 : vector<16x32xf32>
    %c0_9 = arith.constant 0 : index
    %c0_10 = arith.constant 0 : index
    %c0_11 = arith.constant 0 : index
    %24 = vector.load %arg6[%c0_9, %c0_10, %c0_11] : memref<1x32x32xf32, #tpu.memory_space<vmem>>, vector<1x32x32xf32>
    %25 = vector.shape_cast %24 : vector<1x32x32xf32> to vector<32x32xf32>
    %cst_12 = arith.constant dense<0.000000e+00> : vector<16x32xf32>
    %26 = tpu.matmul %23, %25, %cst_12 {dimension_numbers = #tpu.dot_dimension_numbers<[1], [0], [0], [1], [0, 0, 1, 1], [], []>} : vector<16x32xf32>, vector<32x32xf32>, vector<16x32xf32> -> vector<16x32xf32>
    %c0_13 = arith.constant 0 : index
    %c0_14 = arith.constant 0 : index
    %c0_15 = arith.constant 0 : index
    %27 = vector.load %arg7[%c0_13, %c0_14, %c0_15] : memref<1x1x32xf32, #tpu.memory_space<vmem>>, vector<1x1x32xf32>
    %28 = vector.shape_cast %27 : vector<1x1x32xf32> to vector<1x32xf32>
    %29 = vector.broadcast %28 : vector<1x32xf32> to vector<16x32xf32>
    %30 = arith.addf %26, %29 : vector<16x32xf32>
    %c0_16 = arith.constant 0 : index
    %c0_17 = arith.constant 0 : index
    %c0_18 = arith.constant 0 : index
    %31 = vector.load %arg8[%c0_16, %c0_17, %c0_18] : memref<1x16x32xf32, #tpu.memory_space<vmem>>, vector<1x16x32xf32>
    %32 = vector.shape_cast %31 : vector<1x16x32xf32> to vector<16x32xf32>
    %33 = vector.shape_cast %30 : vector<16x32xf32> to vector<1x16x32xf32>
    tpu.vector_store %arg8[%c0_16, %c0_17, %c0_18], %33 {strides = array<i32>} : memref<1x16x32xf32, #tpu.memory_space<vmem>>, vector<1x16x32xf32>,
    return
  }
  func.func @transform_0(%arg0: i32, %arg1: i32, %arg2: i32) -> (i32, i32) {
    %c0_i32 = arith.constant 0 : i32
    %c0_i32_0 = arith.constant 0 : i32
    return %arg0, %c0_i32 : i32, i32
  }
  func.func @transform_1(%arg0: i32, %arg1: i32, %arg2: i32) -> (i32, i32) {
    %c0_i32 = arith.constant 0 : i32
    %c0_i32_0 = arith.constant 0 : i32
    %c0_i32_1 = arith.constant 0 : i32
    return %c0_i32, %c0_i32_0 : i32, i32
  }
  func.func @transform_2(%arg0: i32, %arg1: i32, %arg2: i32) -> (i32, i32) {
    %c0_i32 = arith.constant 0 : i32
    %c0_i32_0 = arith.constant 0 : i32
    %c0_i32_1 = arith.constant 0 : i32
    return %c0_i32, %c0_i32_0 : i32, i32
  }
  func.func @transform_3(%arg0: i32, %arg1: i32, %arg2: i32) -> (i32, i32, i32) {
    %c0_i32 = arith.constant 0 : i32
    %c0_i32_0 = arith.constant 0 : i32
    return %arg1, %c0_i32, %arg2 : i32, i32, i32
  }
  func.func @transform_4(%arg0: i32, %arg1: i32, %arg2: i32) -> (i32, i32, i32) {
    %c0_i32 = arith.constant 0 : i32
    %c0_i32_0 = arith.constant 0 : i32
    return %arg1, %c0_i32, %arg2 : i32, i32, i32
  }
  func.func @transform_5(%arg0: i32, %arg1: i32, %arg2: i32) -> (i32, i32, i32) {
    %c0_i32 = arith.constant 0 : i32
    return %arg1, %arg0, %arg2 : i32, i32, i32
  }
}

</mosaic_0001>

<bundles_post_ra>
// kernel: tpu_custom_call.1
= control target key start
LH: loop header
LB: loop body
LE: loop exit
PB: predicated region body
PF: predicated region fallthrough
CT: control target
= control target key end

     0   :  { %10 = vsyncpa [#allocation3], 0  ;;  %s1168_s0 = inlined_call_operand.hbm [shape: f32[16,32], index: 0, kind: input, shape index: {}]   ;;  %s1169_s1 = inlined_call_operand.vmem [shape: f32[1,32], index: 1, kind: input, shape index: {}]   ;;  %s1170_s2 = inlined_call_operand.vmem [shape: f32[1,32], index: 2, kind: input, shape index: {}]   ;;  %s1171_s3 = inlined_call_operand.hbm [shape: f32[3,32,32], index: 3, kind: input, shape index: {}]   ;;  %s1172_s4 = inlined_call_operand.vmem [shape: f32[3,1,32], index: 4, kind: input, shape index: {}]   ;;  %s1173_s5 = inlined_call_operand.hbm [shape: f32[3,16,32], index: 5, kind: output, shape index: {}]  }
   0x1   :  { %11 = vsyncpa [#allocation6], 0 }
   0x2   :  { %13 = vsyncpa [#allocation6 + $0x1], 0 }
   0x3   :  { %14 = vsyncpa [#allocation4], 0 }
   0x4   :  { %16 = vsyncpa [#allocation4 + $0x1], 0  ;;  %s925_s18 = smov 0   ;;  %s927_s19 = smov 0  }
   0x5   :  { %s929_s20 = smov 0   ;;  %s931_s21 = smov 0  }
   0x6   :  { %s933_s22 = smov 0   ;;  %s935_s23 = smov 0  }
   0x7 LB: > { %s608_s24 = sadd.s32 4294967295, %s886_s23   ;;  %s609_s25 = sadd.s32 4294967294, %s886_s23   ;;  %s886_s23 = sphi %s935_s23, %s22_s23   ;;  %s882_s22 = sphi %s933_s22, %s1198_s22   ;;  %s878_s21 = sphi %s931_s21, %s1197_s21   ;;  %s874_s20 = sphi %s929_s20, %s1196_s20   ;;  %s870_s19 = sphi %s927_s19, %s1195_s19   ;;  %s866_s18 = sphi %s925_s18, %s1194_s18  }
   0x8   : > { %p131_p0 = scmp.ne.s32.totalorder %s870_s19, %s866_s18  ;;  %p959_p1 = scmp.eq.s32.totalorder %s608_s24, 0 }
   0x9   : > { %p963_p2 = scmp.eq.s32.totalorder %s608_s24, 2  ;;  %p193_p3 = scmp.eq.s32.totalorder %s609_s25, 2 }
   0xa   : > { %s1179_s26 = scalar_select %p959_p1, 1, 0 }
   0xb   : > { %s1180_s27 = scalar_select %p963_p2, 1, 0 }
   0xc   : > { %p969_p4 = por %p959_p1, %p131_p0  ;;  %p610_p5 = scmp.ge.s32.totalorder %s886_s23, 1 }
   0xd   : > { %p974_p6 = por %p193_p3, %p131_p0  ;;  %p200_p7 = scmp.lt.s32.totalorder %s886_s23, 4 }
   0xe   : > { %s1181_s28 = scalar_select %p969_p4, 1, 0 }
   0xf   : > { %s1182_s29 = scalar_select %p974_p6, 1, 0 }
  0x10   : > { %p979_p8 = pnand %p610_p5, %p200_p7  ;;  %s888_s6 = smov [#allocation2]  }
  0x11   : > { %s215_s7 = sshll.u32 %s888_s6, 4  ;;  %s37_s9 = sadd.s32 1, %s882_s22  ;;  %s216_s7 = int_to_ptr.vmem [resolvable:$true] %s215_s7 }
  0x12   : > { %s1183_s30 = scalar_select %p979_p8, 1, 0 }
  0x13   : > { %p665_p9 = pneg %p979_p8  ;;  %s742_s12 = scalar_lea.hbm %s1168_s0, 256 }
  0x14   : > { %p743_p11 = scmp.ne.s32.totalorder %s1168_s0, %s742_s12  ;;  %p749_p3 = scmp.lt.u32.totalorder %s742_s12, %s1168_s0 }
  0x15   : > { %p987_p10 = pnand %p665_p9, %p959_p1 }
  0x17   : > { %p744_p12 = pneg %p987_p10 }
  0x19   : > { %p745_p13 = pnand %p744_p12, %p743_p11 }
  0x1b   : > { %p746_p0 = pneg %p745_p13 }
  0x1d   : > { %p751_p5 = pnand %p749_p3, %p746_p0 }
  0x1f   : > { %754 = shalt.err (!%p751_p5)
}
  0x20   : > { %s755_s17 = scalar_lea.vmem %s216_s7, 256  ;;  %p763_p4 = scmp.lt.s32.totalorder %s216_s7, %s216_s7 }
  0x21   : > { %p756_p7 = scmp.ne.s32.totalorder %s216_s7, %s755_s17  ;;  %p764_p1 = scmp.lt.s32.totalorder %s755_s17, %s755_s17 }
  0x23   : > { %p758_p9 = pnand %p756_p7, %p744_p12  ;;  %p765_p8 = por %p764_p1, %p763_p4 }
  0x25   : > { %p759_p6 = pneg %p758_p9 }
  0x27   : > { %p766_p2 = pnand %p765_p8, %p759_p6 }
  0x29   : > { %769 = shalt.err (!%p766_p2)
}
  0x2a   : > { %s1178_s24 = smov 128   ;;  %s890_s25 = smov 8  }
  0x2b   : > { %668 = dma.hbm_to_vmem [thread:$0]  (!%p987_p10), %s1168_s0, 256, %s216_s7, [#allocation3], %s1178_s24, %s1178_s24, %s890_s25  }
  0x2c   : > { %p39_p1 = scmp.ge.s32.totalorder %s37_s9, 3  ;;  %s118_s11 = sadd.s32 1, %s874_s20 }
  0x2d   : > { %p125_p2 = scmp.ne.s32.totalorder %s874_s20, %s870_s19  ;;  %p126_p4 = scmp.eq.s32.totalorder %s886_s23, 0 }
  0x2e   : > { %s1200_s9 = smov (%p39_p1, %s37_s9), 0  ;;  %p1186_p8 = scmp.ne.s32.totalorder %s1180_s27, 0 }
  0x2f   : > { %p1017_p6 = por %p126_p4, %p125_p2  ;;  %s113_s13 = ssub.s32 %s882_s22, %s1200_s9 }
  0x30   : > { %p1023_p11 = por %p1186_p8, %p125_p2  ;;  %p678_p12 = scmp.lt.s32.totalorder %s886_s23, 3 }
  0x31   : > { %p116_p10 = scmp.eq.s32.totalorder %s113_s13, 0  ;;  %s235_s7 = sand.u32 1, %s874_s20  }
  0x32   : > { %s613_s14 = sshll.u32 %s235_s7, 5  ;;  %s630_s16 = sshll.u32 %s882_s22, 9 }
  0x33   : > { %s1032_s15 = scalar_select %p116_p10, %s874_s20, %s118_s11  }
  0x34   : > { %s1038_s10 = scalar_lea.hbm %s1171_s3, %s630_s16  ;;  %s239_s27 = scalar_lea.vmem [#allocation5], %s613_s14 }
  0x35   : > { %s247_s24 = sshll.u32 %s239_s27, 4  ;;  %p1044_p13 = pnand %p678_p12, %p1017_p6  ;;  %s1040_s24 = int_to_ptr.vmem [resolvable:$true] %s247_s24 }
  0x36   : > { %s1048_s11 = scalar_lea.sflag [#allocation6], %s235_s7  ;;  %s770_s17 = scalar_lea.hbm %s1038_s10, 512 }
  0x37   : > { %p771_p0 = scmp.ne.s32.totalorder %s1038_s10, %s770_s17  ;;  %p772_p3 = pneg %p1044_p13 }
  0x38   : > { %s775_s12 = scalar_lea.hbm %s1171_s3, 1536  ;;  %p776_p9 = scmp.lt.u32.totalorder %s1038_s10, %s1171_s3 }
  0x39   : > { %p773_p5 = pnand %p772_p3, %p771_p0  ;;  %p777_p1 = scmp.lt.u32.totalorder %s775_s12, %s770_s17 }
  0x3a   : > { %p779_p4 = scmp.lt.u32.totalorder %s770_s17, %s1038_s10 }
  0x3b   : > { %p774_p7 = pneg %p773_p5  ;;  %p778_p2 = por %p777_p1, %p776_p9 }
  0x3d   : > { %p780_p6 = por %p779_p4, %p778_p2 }
  0x3f   : > { %p781_p8 = pnand %p780_p6, %p774_p7 }
  0x41   : > { %784 = shalt.err (!%p781_p8)
}
  0x42   : > { %s785_s7 = scalar_lea.vmem %s1040_s24, 512  ;;  %s891_s14 = smov [#allocation5]  }
  0x43   : > { %p786_p12 = scmp.ne.s32.totalorder %s1040_s24, %s785_s7  ;;  %s790_s16 = sshll.u32 %s891_s14, 4  ;;  %s791_s16 = int_to_ptr.vmem [resolvable:$false] %s790_s16 }
  0x44   : > { %s792_s6 = scalar_lea.vmem %s791_s16, 1024  ;;  %p793_p5 = scmp.lt.s32.totalorder %s1040_s24, %s791_s16 }
  0x45   : > { %p788_p10 = pnand %p786_p12, %p772_p3  ;;  %p794_p9 = scmp.lt.s32.totalorder %s792_s6, %s785_s7 }
  0x47   : > { %p789_p0 = pneg %p788_p10  ;;  %p795_p1 = por %p794_p9, %p793_p5 }
  0x49   : > { %p796_p2 = pnand %p795_p1, %p789_p0 }
  0x4b   : > { %799 = shalt.err (!%p796_p2)
}
  0x4c   : > { %s1189_s17 = smov 128   ;;  %p1190_p3 = scmp.ne.s32.totalorder %s1183_s30, 0 }
  0x4d   : > { %672 = dma.hbm_to_vmem [thread:$0]  (!%p1044_p13), %s1038_s10, 512, %s1040_s24, %s1048_s11, %s1189_s17, %s1189_s17, %s890_s25  }
  0x4e   : > { %268 = sbr.rel (%p1190_p3) target bundleno = 651 (0x28b), region = 40  ;;  %p1191_p7 = scmp.ne.s32.totalorder (!%p1190_p3), %s1179_s26, 0 }
  0x55   : > { %853 = dma.done.wait (%p1191_p7), [#allocation3], 256  }
  0x56   : > { %855 = vsyncadd (%p1191_p7), [#allocation3], 4294967040  ;;  %s1086_s12 = sand.u32 1, %s870_s19   ;;  %p1192_p4 = scmp.ne.s32.totalorder %s1181_s28, 0 }
  0x57   : > { %s618_s13 = sshll.u32 %s1086_s12, 5  ;;  %s275_s27 = scalar_lea.sflag [#allocation6], %s1086_s12 }
  0x58   : > { %s278_s7 = scalar_lea.vmem [#allocation5], %s618_s13 }
  0x59   : > { %857 = dma.done.wait (%p1192_p4), %s275_s27, 512  }
  0x5a   : > { %859 = vsyncadd (%p1192_p4), %s275_s27, 4294966784  ;;  %vm323_vm0 = vcmask 261120   ;;  %v319_v0 = vld [vmem:[#allocation2] sm:$0xff]  ;;  %v320_v1 = vld [vmem:[#allocation2 + $0x8] sm:$0xff]  ;;  %p312_p13 = scmp.lt.s32.totalorder %s878_s21, 2  ;;  %s619_s25 = sshll.u32 %s1086_s12, 4 }
  0x5b   : > { %v324_v2 = vsel %vm323_vm0, %v319_v0, 0.0  ;;  %v327_v3 = vsel %vm323_vm0, %v320_v1, 0.0  ;;  %v381_v14 = vld [vmem:[%s278_s7] sm:$0xff]  ;;  %v382_v15 = vld [vmem:[%s278_s7 + $0x8] sm:$0xff]  ;;  %v383_v16 = vld [vmem:[%s278_s7 + $0x10] sm:$0xff]  ;;  %s310_s6 = scalar_lea.vmem [#allocation7], %s619_s25 }
  0x5c   : > { %325 = vadd.xlane.f32.xlu0 %v324_v2  ;;  %v649_v17 = vpack.c.bf16 %v382_v15, %v381_v14  ;;  %v384_v18 = vld [vmem:[%s278_s7 + $0x18] sm:$0xff]  ;;  %v620_v36 = vld [vmem:[%s1169_s1] ss:$0 sm:$0xff]  ;;  %s313_s10 = scalar_select %p312_p13, %s878_s21, 2 }
  0x5d   : > { %v653_v19 = vpack.c.bf16 %v384_v18, %v383_v16  ;;  %v621_v39 = vld [vmem:[%s1170_s2] ss:$0 sm:$0xff]  ;;  %s492_s17 = sshll.u32 %s310_s6, 4  ;;  %s631_s13 = sshll.u32 %s878_s21, 8  ;;  %s1113_s17 = int_to_ptr.vmem [resolvable:$true] %s492_s17 }
  0x5e   : > { %650 = vmatprep.subr.bf16.mxu0 %v649_v17  ;;  %s317_s16 = scalar_lea.vmem %s1172_s4, %s313_s10  ;;  %s1118_s26 = scalar_lea.hbm %s1173_s5, %s631_s13 }
  0x5f   : > { %652 = vmatpush3.bf16.msra.mxu0 %v649_v17  ;;  %v622_v46 = vld [vmem:[%s317_s16] ss:$0 sm:$0xff]  ;;  %s476_s28 = scalar_lea.sflag [#allocation4], %s1086_s12  ;;  %s800_s21 = scalar_lea.vmem %s1113_s17, 256 }
  0x60   : > { %328 = vadd.xlane.f32.xlu0 %v327_v3  ;;  %654 = vmatprep.subr.bf16.mxu0 %v653_v19  ;;  %p801_p6 = scmp.ne.s32.totalorder %s1113_s17, %s800_s21  ;;  %s892_s30 = smov [#allocation7]  }
  0x61   : > { %s804_s24 = sshll.u32 %s892_s30, 4  ;;  %s805_s24 = int_to_ptr.vmem [resolvable:$false] %s804_s24 }
  0x62   : > { %p802_p8 = pnand %p801_p6, %p1023_p11  ;;  %s806_s25 = scalar_lea.vmem %s805_s24, 512 }
  0x63   : > { %656 = vmatpush3.bf16.msra.mxu0 %v653_v19  ;;  %p807_p10 = scmp.lt.s32.totalorder %s1113_s17, %s805_s24  ;;  %p808_p0 = scmp.lt.s32.totalorder %s806_s25, %s800_s21 }
  0x64   : > { %p803_p12 = pneg %p802_p8 }
  0x65   : > { %p809_p5 = por %p808_p0, %p807_p10 }
  0x67   : > { %p810_p9 = pnand %p809_p5, %p803_p12 }
  0xe9   : > { %v326_v4 = vpop.xlane.xlu0 %325 }
  0xea   : > { %v331_v5 = vmul.f32 0.03125, %v326_v4 }
  0xec   : > { %v333_v6 = vsub.f32 %v319_v0, %v331_v5 }
  0xed   : > { %v329_v7 = vpop.xlane.xlu0 %328 }
  0xee   : > { %v332_v8 = vmul.f32 0.03125, %v329_v7  ;;  %v335_v9 = vmul.f32 %v333_v6, %v333_v6  ;;  %v369_v37 = vmul.f32 %v620_v36, %v333_v6 }
  0xf0   : > { %v334_v10 = vsub.f32 %v320_v1, %v332_v8  ;;  %v337_v11 = vsel %vm323_vm0, %v335_v9, 0.0 }
  0xf1   : > { %338 = vadd.xlane.f32.xlu1 %v337_v11 }
  0xf2   : > { %v336_v12 = vmul.f32 %v334_v10, %v334_v10  ;;  %v370_v41 = vmul.f32 %v620_v36, %v334_v10 }
  0xf4   : > { %v340_v13 = vsel %vm323_vm0, %v336_v12, 0.0 }
  0xf5   : > { %341 = vadd.xlane.f32.xlu1 %v340_v13 }
 0x17e   : > { %v339_v20 = vpop.xlane.xlu1 %338 }
 0x17f   : > { %v343_v21 = vmul.f32 0.032258064, %v339_v20 }
 0x181   : > { %734 = vrsqrt.f32 %v343_v21  ;;  %vm347_vm1 = vcmp.eq.f32.partialorder %v343_v21, inf  ;;  %v350_v26 = vand.u32 2147483648, %v343_v21  ;;  %vm349_vm2 = vcmp.eq.f32.partialorder %v343_v21, 0.0 }
 0x182   : > { %v342_v22 = vpop.xlane.xlu1 %341 }
 0x183   : > { %v344_v23 = vmul.f32 0.032258064, %v342_v22 }
 0x185   : > { %736 = vrsqrt.f32 %v344_v23  ;;  %vm354_vm3 = vcmp.eq.f32.partialorder %v344_v23, inf  ;;  %v357_v32 = vand.u32 2147483648, %v344_v23  ;;  %vm356_vm4 = vcmp.eq.f32.partialorder %v344_v23, 0.0 }
 0x18b   : > { %v735_v24 = vpop.eup %734 }
 0x18c   : > { %v346_v25 = vmul.f32 %v735_v24, %v343_v21 }
 0x18e   : > { %v348_v27 = vsel %vm347_vm1, %v343_v21, %v346_v25 }
 0x18f   : > { %v737_v28 = vpop.eup %736  ;;  %v351_v29 = vsel %vm349_vm2, %v350_v26, %v348_v27 }
 0x190   : > { %v353_v30 = vmul.f32 %v737_v28, %v344_v23  ;;  %v359_v31 = vadd.f32 1e-06, %v351_v29 }
 0x192   : > { %v355_v33 = vsel %vm354_vm3, %v344_v23, %v353_v30  ;;  %738 = vrcp.f32 %v359_v31 }
 0x193   : > { %v358_v34 = vsel %vm356_vm4, %v357_v32, %v355_v33 }
 0x194   : > { %v360_v35 = vadd.f32 1e-06, %v358_v34 }
 0x196   : > { %740 = vrcp.f32 %v360_v35 }
 0x19c   : > { %v739_v38 = vpop.eup %738 }
 0x19d   : > { %v371_v40 = vmul.f32 %v739_v38, %v369_v37 }
 0x19f   : > { %v379_v42 = vadd.f32 %v621_v39, %v371_v40 }
 0x1a0   : > { %v741_v43 = vpop.eup %740 }
 0x1a1   : > { %v372_v44 = vmul.f32 %v741_v43, %v370_v41  ;;  %646 = vmatprep.mubr.msk.f32.mxu0 %vm323_vm0, %v379_v42 }
 0x1a3   : > { %v380_v45 = vadd.f32 %v621_v39, %v372_v44 }
 0x1a5   : > { %647 = vmatmul.mubr.msk.f32.vlgmr.msra.gmra.mrb[0].mxu0 %vm323_vm0, %v380_v45 }
 0x278   : > { %v648_v47 = vpop.f32.mrb[0].mxu0 }
 0x279   : > { %v470_v48 = vadd.f32 %v648_v47, %v622_v46  ;;  %v464_v49 = vpop.f32.mrb[1].mxu0 }
 0x27a   : > { %v465_v50 = vadd.f32 %v622_v46, %v464_v49 }
 0x27b   : > { %474 = vst.msk [vmem:[%s310_s6 + $0x8] sm:$0xff] %vm323_vm0, %v470_v48 }
 0x27c   : > { %473 = vst.msk [vmem:[%s310_s6] sm:$0xff] %vm323_vm0, %v465_v50 }
 0x27d   : > { %813 = shalt.err (!%p810_p9)
}
 0x27e   : > { %s814_s10 = scalar_lea.hbm %s1118_s26, 256  ;;  %s818_s16 = scalar_lea.hbm %s1173_s5, 768 }
 0x27f   : > { %p815_p1 = scmp.ne.s32.totalorder %s1118_s26, %s814_s10  ;;  %p819_p7 = scmp.lt.u32.totalorder %s1118_s26, %s1173_s5 }
 0x280   : > { %p820_p4 = scmp.lt.u32.totalorder %s818_s16, %s814_s10  ;;  %p822_p6 = scmp.lt.u32.totalorder %s814_s10, %s1118_s26 }
 0x281   : > { %p816_p2 = pnand %p815_p1, %p1023_p11 }
 0x282   : > { %p821_p13 = por %p820_p4, %p819_p7 }
 0x283   : > { %p817_p3 = pneg %p816_p2 }
 0x284   : > { %p823_p8 = por %p822_p6, %p821_p13 }
 0x286   : > { %p824_p12 = pnand %p823_p8, %p817_p3 }
 0x288   : > { %827 = shalt.err (!%p824_p12)
}
 0x289   : > { %s893_s27 = smov 128   ;;  %s894_s7 = smov 8  }
 0x28a   : > { %663 = dma.vmem_to_hbm [thread:$0]  (%p1023_p11), %s1113_s17, 256, %s1118_s26, %s476_s28, %s893_s27, %s893_s27, %s894_s7  }
 0x28b PF: > { %p680_p10 = scmp.ge.s32.totalorder %s886_s23, 2  ;;  %s507_s21 = sand.u32 1, %s866_s18  }
 0x28c   : > { %p1193_p0 = scmp.ne.s32.totalorder %s1182_s29, 0  ;;  %s508_s30 = scalar_lea.sflag [#allocation4], %s507_s21 }
 0x28e   : > { %p674_p5 = pnand %p680_p10, %p1193_p0 }
 0x290   : > { %861 = dma.done.wait (!%p674_p5), %s508_s30, 256  }
 0x291   : > { %863 = vsyncadd (!%p674_p5), %s508_s30, 4294967040  ;;  %s22_s23 = sadd.s32 1, %s886_s23   ;;  %s1194_s18 = smov %s870_s19 }
 0x292   : > { %p19_p9 = scmp.ge.s32.totalorder %s22_s23, 5   ;;  %s1195_s19 = smov %s874_s20 }
 0x293   : > { %s1196_s20 = smov %s1032_s15  ;;  %s1197_s21 = smov %s882_s22 }
 0x294   : > { %s1198_s22 = smov %s1200_s9  ;;  %21 = sbr.rel (!%p19_p9) target bundleno = 7 (0x7), region = 94 }
 0x29b   :  { %513 = vsyncpa [#allocation3], 1 }
 0x29c   :  { %515 = vsyncpa [#allocation3 + $0x1], 1 }
 0x29d   :  { %516 = vsyncpa [#allocation6], 1 }
 0x29e   :  { %518 = vsyncpa [#allocation6 + $0x1], 1 }
 0x29f   :  { %519 = vsyncpa [#allocation4], 1 }
 0x2a0   :  { %521 = vsyncpa [#allocation4 + $0x1], 1 }

</bundles_post_ra>
